<compile_context>
chip_gen: v5e
topology: v5e:2x2
jax: 0.10.0
libtpu: 0.0.40
codegen_flags: <defaults>
</compile_context>

<pallas_src>
import numpy as np
import jax
import jax.numpy as jnp
from jax.experimental import pallas as pl
from jax.experimental.pallas import tpu as pltpu


# ----------------------------------------------------------------------------
# Glue: PyTorch-exact bilinear interpolation (align_corners=False) expressed as
# two small interpolation-matrix matmuls.  Matrices are built with numpy at
# trace time, so they are compile-time constants.
# ----------------------------------------------------------------------------
def _interp_matrix(out_size, in_size):
    scale = in_size / out_size
    o = np.arange(out_size, dtype=np.float64)
    src = np.maximum((o + 0.5) * scale - 0.5, 0.0)
    i0 = np.clip(np.floor(src).astype(np.int64), 0, in_size - 1)
    i1 = np.minimum(i0 + 1, in_size - 1)
    frac = (src - i0).astype(np.float32)
    m = np.zeros((out_size, in_size), dtype=np.float32)
    m[np.arange(out_size), i0] += 1.0 - frac
    m[np.arange(out_size), i1] += frac
    return jnp.asarray(m)


def bilinear_resize_nchw(y, out_h, out_w):
    in_h, in_w = y.shape[2], y.shape[3]
    if (in_h, in_w) == (out_h, out_w):
        return y
    a_h = _interp_matrix(out_h, in_h)
    a_w = _interp_matrix(out_w, in_w)
    y = jnp.einsum('pw,bchw->bchp', a_w, y, precision=jax.lax.Precision.HIGHEST)
    y = jnp.einsum('oh,bchp->bcop', a_h, y, precision=jax.lax.Precision.HIGHEST)
    return y


# ----------------------------------------------------------------------------
# Pallas kernel: folded 1x1 conv (+bias+BN) + exact GELU, channels-first output.
# Activations arrive as (C, tm) tiles; output block is (Cout, tm) (lane-dense).
# ----------------------------------------------------------------------------
def _cefim_kernel(e_ref, x_ref, y_ref, we_ref, wx_ref, wy_ref, b_ref, o_ref):
    acc = jnp.dot(wx_ref[...], x_ref[...], preferred_element_type=jnp.float32)
    acc = acc + jnp.dot(wy_ref[...], y_ref[...], preferred_element_type=jnp.float32)
    # edge has only 2 channels: rank-1 broadcast updates on the VPU
    # (avoids a tiny-K MXU matmul; kernel is memory-bound anyway).
    e = e_ref[...]
    we = we_ref[...]
    for k in range(e_ref.shape[0]):
        acc = acc + we[:, k:k + 1] * e[k:k + 1, :]
    acc = acc + b_ref[...]            # conv bias + BN already folded in
    # exact GELU (matches F.gelu default, erf-based)
    inv_sqrt2 = 0.7071067811865476
    o_ref[...] = (0.5 * acc * (1.0 + jax.lax.erf(acc * inv_sqrt2))).astype(o_ref.dtype)


def _conv_bn_gelu(e_f, x_f, y_f, folded, *, tm_max=4096):
    b, ce, hw = e_f.shape
    c1 = x_f.shape[1]
    c2 = y_f.shape[1]
    w_e, w_x, w_y, bias = folded["w_e"], folded["w_x"], folded["w_y"], folded["bias"]
    cout = w_x.shape[0]

    # Lane-dense tile along the pixel axis: multiple of 128, at most tm_max,
    # balanced over the minimal number of tiles (minimizes masked waste).
    hw128 = pl.cdiv(hw, 128) * 128
    n_tiles = pl.cdiv(hw128, tm_max)
    tm = pl.cdiv(pl.cdiv(hw128, n_tiles), 128) * 128
    grid = (b, pl.cdiv(hw, tm))

    cin = ce + c1 + c2
    cost = pl.CostEstimate(
        flops=2 * b * hw * cin * cout,
        transcendentals=b * hw * cout,
        bytes_accessed=4 * (b * hw * (cin + cout) + cout * (cin + 1)),
    )

    out = pl.pallas_call(
        _cefim_kernel,
        out_shape=jax.ShapeDtypeStruct((b, cout, hw), jnp.float32),
        grid_spec=pltpu.PrefetchScalarGridSpec(
            num_scalar_prefetch=0,
            grid=grid,
            in_specs=[
                pl.BlockSpec((None, ce, tm), lambda bi, mi: (bi, 0, mi)),
                pl.BlockSpec((None, c1, tm), lambda bi, mi: (bi, 0, mi)),
                pl.BlockSpec((None, c2, tm), lambda bi, mi: (bi, 0, mi)),
                # Weight / bias blocks: constant block index -> fetched once and
                # kept resident in VMEM across the whole grid.
                pl.BlockSpec((cout, ce), lambda bi, mi: (0, 0)),
                pl.BlockSpec((cout, c1), lambda bi, mi: (0, 0)),
                pl.BlockSpec((cout, c2), lambda bi, mi: (0, 0)),
                pl.BlockSpec((cout, 1), lambda bi, mi: (0, 0)),
            ],
            out_specs=pl.BlockSpec((None, cout, tm), lambda bi, mi: (bi, 0, mi)),
        ),
        compiler_params=pltpu.CompilerParams(
            dimension_semantics=("parallel", "parallel")),
        cost_estimate=cost,
    )(e_f, x_f, y_f, w_e, w_x, w_y, bias)
    return out


# ----------------------------------------------------------------------------
# CEFIM forward (expects folded params; see fold_params)
# ----------------------------------------------------------------------------
def cefim_forward(x, y, edge, folded):
    b, c1, h, w = x.shape
    c2 = y.shape[1]
    ce = edge.shape[1]

    # 1. upsample y to x's spatial size (bilinear, align_corners=False)
    y_up = bilinear_resize_nchw(y, h, w)

    # 2-3. conv1 + BN + GELU, with the 16-group channel interleave folded into
    #      the weights (no concat, no NCHW<->NHWC transposes).
    hw = h * w
    out = _conv_bn_gelu(
        edge.reshape(b, ce, hw),
        x.reshape(b, c1, hw),
        y_up.reshape(b, c2, hw),
        folded,
    )
    cout = folded["w_x"].shape[0]

    # TODO(synk): DSACA ("casa") definition is not provided in the reference code;
    # applied as identity here.
    return out.reshape(b, cout, h, w)


# ----------------------------------------------------------------------------
# Parameters: raw (original PyTorch layout) and the one-time folding step.
# ----------------------------------------------------------------------------
def init_params(key, in_channels1, in_channels2, out_channels):
    """Raw parameters in the original layout (interleaved 1x1 conv weight)."""
    cin_full = in_channels1 + in_channels2 + 32
    k1, k2, k3, k4 = jax.random.split(key, 4)
    conv_w = 0.05 * jax.random.normal(k1, (out_channels, cin_full), jnp.float32)
    conv_b = 0.05 * jax.random.normal(k2, (out_channels,), jnp.float32)
    gamma = 1.0 + 0.1 * jax.random.normal(k3, (out_channels,), jnp.float32)
    beta = 0.1 * jax.random.normal(k4, (out_channels,), jnp.float32)
    return {
        "conv_w": conv_w, "conv_b": conv_b, "gamma": gamma, "beta": beta,
        "running_mean": jnp.zeros((out_channels,), jnp.float32),
        "running_var": jnp.ones((out_channels,), jnp.float32),
        "eps": 1e-5,
    }


def fold_params(raw, in_channels1, in_channels2, num_splits=16):
    """Fold BN (eval) + conv bias into the weights and undo the 16-group channel
    interleave so the kernel consumes [edge, x, y_up] directly."""
    cx = in_channels1 // num_splits
    cy = in_channels2 // num_splits
    ce = 2
    group = ce + cx + cy
    cout = raw["conv_w"].shape[0]

    bn_scale = raw["gamma"] / jnp.sqrt(raw["running_var"] + raw["eps"])
    bn_shift = raw["beta"] - raw["running_mean"] * bn_scale

    w = raw["conv_w"].reshape(cout, num_splits, group)
    w_e = w[:, :, :ce].sum(axis=1)                            # (cout, 2)
    w_x = w[:, :, ce:ce + cx].reshape(cout, in_channels1)     # (cout, C1)
    w_y = w[:, :, ce + cx:].reshape(cout, in_channels2)       # (cout, C2)

    scale = bn_scale[:, None]
    bias = raw["conv_b"] * bn_scale + bn_shift
    return {
        "w_e": w_e * scale,
        "w_x": w_x * scale,
        "w_y": w_y * scale,
        "bias": bias[:, None],                                 # (cout, 1)
    }


# ----------------------------------------------------------------------------
# Pure-JAX reference mirroring the original PyTorch graph (for a sanity check).
# ----------------------------------------------------------------------------
def cefim_reference(x, y, edge, raw, num_splits=16):
    b, c1, h, w = x.shape
    c2 = y.shape[1]
    y_up = bilinear_resize_nchw(y, h, w)
    cx, cy = c1 // num_splits, c2 // num_splits
    groups = []
    for i in range(num_splits):
        groups.append(edge)
        groups.append(x[:, i * cx:(i + 1) * cx])
        groups.append(y_up[:, i * cy:(i + 1) * cy])
    s = jnp.concatenate(groups, axis=1)
    conv = jnp.einsum('oc,bchw->bohw', raw["conv_w"], s,
                      precision=jax.lax.Precision.HIGHEST)
    conv = conv + raw["conv_b"][None, :, None, None]
    bn_scale = raw["gamma"] / jnp.sqrt(raw["running_var"] + raw["eps"])
    bn_shift = raw["beta"] - raw["running_mean"] * bn_scale
    z = conv * bn_scale[None, :, None, None] + bn_shift[None, :, None, None]
    return 0.5 * z * (1.0 + jax.lax.erf(z * 0.7071067811865476))


if __name__ == "__main__":
    key = jax.random.PRNGKey(0)
    kx, ky, ke, kp = jax.random.split(key, 4)

    B, C1, C2, COUT = 2, 16, 32, 32
    H = W = 16
    Hy = Wy = 8  # y comes at a lower resolution and is upsampled in forward

    x = jax.random.normal(kx, (B, C1, H, W), jnp.float32)
    y = jax.random.normal(ky, (B, C2, Hy, Wy), jnp.float32)
    edge = jax.random.normal(ke, (B, 2, H, W), jnp.float32)  # 16*2 = 32 extra channels

    raw = init_params(kp, C1, C2, COUT)
    folded = fold_params(raw, C1, C2)

    fwd = jax.jit(cefim_forward)
    out = fwd(x, y, edge, folded)
    jax.block_until_ready(out)

    assert out.shape == (B, COUT, H, W), out.shape
    assert bool(jnp.all(jnp.isfinite(out)))

    # correctness vs. the un-folded reference graph
    ref = cefim_reference(x, y, edge, raw)
    max_err = float(jnp.max(jnp.abs(out - ref)))
    assert max_err < 3e-2, f"max abs error vs reference: {max_err}"

    print("KERNEL_OK")
</pallas_src>

<mosaic_0001>
module attributes {stable_mosaic.version = 11 : i64} {
  func.func @_cefim_kernel(%arg0: i32, %arg1: i32, %arg2: memref<1x2x256xf32, #tpu.memory_space<vmem>>, %arg3: memref<1x16x256xf32, #tpu.memory_space<vmem>>, %arg4: memref<1x32x256xf32, #tpu.memory_space<vmem>>, %arg5: memref<32x2xf32, #tpu.memory_space<vmem>>, %arg6: memref<32x16xf32, #tpu.memory_space<vmem>>, %arg7: memref<32x32xf32, #tpu.memory_space<vmem>>, %arg8: memref<32x1xf32, #tpu.memory_space<vmem>>, %arg9: memref<1x32x256xf32, #tpu.memory_space<vmem>>) attributes {dimension_semantics = [#tpu.dimension_semantics<parallel>, #tpu.dimension_semantics<parallel>], iteration_bounds = array<i64: 2, 1>, scalar_prefetch = 0 : i64, scratch_operands = 0 : i64, tpu.core_type = #tpu.core_type<tc>, window_params = [{transform_indices = @transform_0, window_bounds = array<i64: 1, 2, 256>}, {transform_indices = @transform_1, window_bounds = array<i64: 1, 16, 256>}, {transform_indices = @transform_2, window_bounds = array<i64: 1, 32, 256>}, {pipeline_mode = #tpu.pipeline_mode<synchronous>, transform_indices = @transform_3, window_bounds = array<i64: 32, 2>}, {pipeline_mode = #tpu.pipeline_mode<synchronous>, transform_indices = @transform_4, window_bounds = array<i64: 32, 16>}, {pipeline_mode = #tpu.pipeline_mode<synchronous>, transform_indices = @transform_5, window_bounds = array<i64: 32, 32>}, {pipeline_mode = #tpu.pipeline_mode<synchronous>, transform_indices = @transform_6, window_bounds = array<i64: 32, 1>}, {transform_indices = @transform_7, window_bounds = array<i64: 1, 32, 256>}]} {
    %c0 = arith.constant 0 : index
    %c0_0 = arith.constant 0 : index
    %0 = vector.load %arg6[%c0, %c0_0] : memref<32x16xf32, #tpu.memory_space<vmem>>, vector<32x16xf32>
    %c0_1 = arith.constant 0 : index
    %c0_2 = arith.constant 0 : index
    %c0_3 = arith.constant 0 : index
    %1 = vector.load %arg3[%c0_1, %c0_2, %c0_3] : memref<1x16x256xf32, #tpu.memory_space<vmem>>, vector<1x16x256xf32>
    %2 = vector.shape_cast %1 : vector<1x16x256xf32> to vector<16x256xf32>
    %cst = arith.constant dense<0.000000e+00> : vector<32x256xf32>
    %3 = tpu.matmul %0, %2, %cst {dimension_numbers = #tpu.dot_dimension_numbers<[1], [0], [0], [1], [0, 0, 1, 1], [], []>} : vector<32x16xf32>, vector<16x256xf32>, vector<32x256xf32> -> vector<32x256xf32>
    %c0_4 = arith.constant 0 : index
    %c0_5 = arith.constant 0 : index
    %4 = vector.load %arg7[%c0_4, %c0_5] : memref<32x32xf32, #tpu.memory_space<vmem>>, vector<32x32xf32>
    %c0_6 = arith.constant 0 : index
    %c0_7 = arith.constant 0 : index
    %c0_8 = arith.constant 0 : index
    %5 = vector.load %arg4[%c0_6, %c0_7, %c0_8] : memref<1x32x256xf32, #tpu.memory_space<vmem>>, vector<1x32x256xf32>
    %6 = vector.shape_cast %5 : vector<1x32x256xf32> to vector<32x256xf32>
    %cst_9 = arith.constant dense<0.000000e+00> : vector<32x256xf32>
    %7 = tpu.matmul %4, %6, %cst_9 {dimension_numbers = #tpu.dot_dimension_numbers<[1], [0], [0], [1], [0, 0, 1, 1], [], []>} : vector<32x32xf32>, vector<32x256xf32>, vector<32x256xf32> -> vector<32x256xf32>
    %8 = arith.addf %3, %7 : vector<32x256xf32>
    %c0_10 = arith.constant 0 : index
    %c0_11 = arith.constant 0 : index
    %c0_12 = arith.constant 0 : index
    %9 = vector.load %arg2[%c0_10, %c0_11, %c0_12] : memref<1x2x256xf32, #tpu.memory_space<vmem>>, vector<1x2x256xf32>
    %10 = vector.shape_cast %9 : vector<1x2x256xf32> to vector<2x256xf32>
    %c0_13 = arith.constant 0 : index
    %c0_14 = arith.constant 0 : index
    %11 = vector.load %arg5[%c0_13, %c0_14] : memref<32x2xf32, #tpu.memory_space<vmem>>, vector<32x2xf32>
    %12 = vector.extract_strided_slice %11 {offsets = [0, 0], sizes = [32, 1], strides = [1, 1]} : vector<32x2xf32> to vector<32x1xf32>
    %13 = vector.extract_strided_slice %10 {offsets = [0, 0], sizes = [1, 256], strides = [1, 1]} : vector<2x256xf32> to vector<1x256xf32>
    %14 = vector.broadcast %12 : vector<32x1xf32> to vector<32x256xf32>
    %15 = vector.broadcast %13 : vector<1x256xf32> to vector<32x256xf32>
    %16 = arith.mulf %14, %15 : vector<32x256xf32>
    %17 = arith.addf %8, %16 : vector<32x256xf32>
    %18 = vector.extract_strided_slice %11 {offsets = [0, 1], sizes = [32, 1], strides = [1, 1]} : vector<32x2xf32> to vector<32x1xf32>
    %19 = vector.extract_strided_slice %10 {offsets = [1, 0], sizes = [1, 256], strides = [1, 1]} : vector<2x256xf32> to vector<1x256xf32>
    %20 = vector.broadcast %18 : vector<32x1xf32> to vector<32x256xf32>
    %21 = vector.broadcast %19 : vector<1x256xf32> to vector<32x256xf32>
    %22 = arith.mulf %20, %21 : vector<32x256xf32>
    %23 = arith.addf %17, %22 : vector<32x256xf32>
    %c0_15 = arith.constant 0 : index
    %c0_16 = arith.constant 0 : index
    %24 = vector.load %arg8[%c0_15, %c0_16] : memref<32x1xf32, #tpu.memory_space<vmem>>, vector<32x1xf32>
    %25 = vector.broadcast %24 : vector<32x1xf32> to vector<32x256xf32>
    %26 = arith.addf %23, %25 : vector<32x256xf32>
    %cst_17 = arith.constant 5.000000e-01 : f32
    %27 = vector.broadcast %cst_17 : f32 to vector<32x256xf32>
    %28 = arith.mulf %27, %26 : vector<32x256xf32>
    %cst_18 = arith.constant 0.707106769 : f32
    %29 = vector.broadcast %cst_18 : f32 to vector<32x256xf32>
    %30 = arith.mulf %26, %29 : vector<32x256xf32>
    %31 = math.erf %30 : vector<32x256xf32>
    %cst_19 = arith.constant 1.000000e+00 : f32
    %32 = vector.broadcast %cst_19 : f32 to vector<32x256xf32>
    %33 = arith.addf %32, %31 : vector<32x256xf32>
    %34 = arith.mulf %28, %33 : vector<32x256xf32>
    %c0_20 = arith.constant 0 : index
    %c0_21 = arith.constant 0 : index
    %c0_22 = arith.constant 0 : index
    %35 = vector.load %arg9[%c0_20, %c0_21, %c0_22] : memref<1x32x256xf32, #tpu.memory_space<vmem>>, vector<1x32x256xf32>
    %36 = vector.shape_cast %35 : vector<1x32x256xf32> to vector<32x256xf32>
    %37 = vector.shape_cast %34 : vector<32x256xf32> to vector<1x32x256xf32>
    tpu.vector_store %arg9[%c0_20, %c0_21, %c0_22], %37 {strides = array<i32>} : memref<1x32x256xf32, #tpu.memory_space<vmem>>, vector<1x32x256xf32>,
    return
  }
  func.func @transform_0(%arg0: i32, %arg1: i32) -> (i32, i32, i32) {
    %c0_i32 = arith.constant 0 : i32
    %c0_i32_0 = arith.constant 0 : i32
    return %arg0, %c0_i32, %arg1 : i32, i32, i32
  }
  func.func @transform_1(%arg0: i32, %arg1: i32) -> (i32, i32, i32) {
    %c0_i32 = arith.constant 0 : i32
    %c0_i32_0 = arith.constant 0 : i32
    return %arg0, %c0_i32, %arg1 : i32, i32, i32
  }
  func.func @transform_2(%arg0: i32, %arg1: i32) -> (i32, i32, i32) {
    %c0_i32 = arith.constant 0 : i32
    %c0_i32_0 = arith.constant 0 : i32
    return %arg0, %c0_i32, %arg1 : i32, i32, i32
  }
  func.func @transform_3(%arg0: i32, %arg1: i32) -> (i32, i32) {
    %c0_i32 = arith.constant 0 : i32
    %c0_i32_0 = arith.constant 0 : i32
    %c0_i32_1 = arith.constant 0 : i32
    return %c0_i32, %c0_i32_0 : i32, i32
  }
  func.func @transform_4(%arg0: i32, %arg1: i32) -> (i32, i32) {
    %c0_i32 = arith.constant 0 : i32
    %c0_i32_0 = arith.constant 0 : i32
    %c0_i32_1 = arith.constant 0 : i32
    return %c0_i32, %c0_i32_0 : i32, i32
  }
  func.func @transform_5(%arg0: i32, %arg1: i32) -> (i32, i32) {
    %c0_i32 = arith.constant 0 : i32
    %c0_i32_0 = arith.constant 0 : i32
    %c0_i32_1 = arith.constant 0 : i32
    return %c0_i32, %c0_i32_0 : i32, i32
  }
  func.func @transform_6(%arg0: i32, %arg1: i32) -> (i32, i32) {
    %c0_i32 = arith.constant 0 : i32
    %c0_i32_0 = arith.constant 0 : i32
    %c0_i32_1 = arith.constant 0 : i32
    return %c0_i32, %c0_i32_0 : i32, i32
  }
  func.func @transform_7(%arg0: i32, %arg1: i32) -> (i32, i32, i32) {
    %c0_i32 = arith.constant 0 : i32
    %c0_i32_0 = arith.constant 0 : i32
    return %arg0, %c0_i32, %arg1 : i32, i32, i32
  }
}

</mosaic_0001>

<bundles_post_ra>
// kernel: cefim_forward.1
= control target key start
LH: loop header
LB: loop body
LE: loop exit
PB: predicated region body
PF: predicated region fallthrough
CT: control target
= control target key end

     0   :  { %s1311_s24 = smov 0   ;;  %s1313_s25 = smov 0   ;;  %s1733_s0 = inlined_call_operand.vmem [shape: f32[2,2,256], index: 0, kind: input, shape index: {}]   ;;  %s1734_s1 = inlined_call_operand.vmem [shape: f32[2,16,256], index: 1, kind: input, shape index: {}]   ;;  %s1735_s2 = inlined_call_operand.vmem [shape: f32[2,32,256], index: 2, kind: input, shape index: {}]   ;;  %s1736_s3 = inlined_call_operand.vmem [shape: f32[32,2], index: 3, kind: input, shape index: {}]   ;;  %s1737_s4 = inlined_call_operand.vmem [shape: f32[32,16], index: 4, kind: input, shape index: {}]   ;;  %s1738_s5 = inlined_call_operand.vmem [shape: f32[32,32], index: 5, kind: input, shape index: {}]   ;;  %s1739_s6 = inlined_call_operand.vmem [shape: f32[32,1], index: 6, kind: input, shape index: {}]   ;;  %s1740_s7 = inlined_call_operand.vmem [shape: f32[2,32,256], index: 7, kind: output, shape index: {}]  }
   0x1   :  { %s1315_s26 = smov 0  }
   0x2 LB: > { %s29_s27 = sadd.s32 1, %s1263_s25  ;;  %p1157_p0 = scmp.ge.s32.totalorder %s1267_s26, 1  ;;  %s1267_s26 = sphi %s1315_s26, %s17_s26   ;;  %s1263_s25 = sphi %s1313_s25, %s1748_s25   ;;  %s1259_s24 = sphi %s1311_s24, %s1747_s24  }
   0x3   : > { %p31_p1 = scmp.ge.s32.totalorder %s29_s27, 2  ;;  %p292_p2 = scmp.lt.s32.totalorder %s1267_s26, 3 }
   0x5   : > { %s1750_s27 = smov (%p31_p1, %s29_s27), 0  ;;  %p293_p3 = pnand %p1157_p0, %p292_p2 }
   0x6   : > { %p351_p4 = scmp.lt.s32.totalorder (!%p293_p3), %s1259_s24, 1 }
   0x7   : > { %296 = sbr.rel (%p293_p3) target bundleno = 272 (0x110), region = 48 }
   0xc   : > { %v555_v0 = vld [vmem:[%s1736_s3 + $0x10] sm:$0xff]  ;;  %v1269_v1 = vmov 0   ;;  %v1270_v2 = vmov 1   ;;  %s1752_s24 = smov (!%p351_p4, %s1259_s24), 1  ;;  %v553_v3 = vld [vmem:[%s1736_s3] sm:$0xff]  ;;  %vm481_vm0 = vcmask 130048  }
   0xd   : > { %1222 = vset.pattern.permute.xlu1 %v1269_v1  ;;  %1224 = vset.pattern.permute.xlu0 %v1270_v2  ;;  %s1193_s9 = sshll.u32 %s1752_s24, 5  ;;  %s1194_s13 = sshll.u32 %s1752_s24, 6  ;;  %v390_v10 = vld [vmem:[%s1737_s4] sm:$0xff]  ;;  %v556_v13 = vld [vmem:[%s1736_s3 + $0x18] sm:$0xff]  ;;  %vm410_vm1 = vcmask 261120   ;;  %v554_v19 = vld [vmem:[%s1736_s3 + $0x8] sm:$0xff] }
   0xe   : > { %569 = vperm.xlu1 %1222, %v555_v0   ;;  %609 = vperm.xlu0 %1224, %v555_v0   ;;  %s368_s12 = scalar_lea.vmem %s1734_s1, %s1193_s9  ;;  %s378_s16 = scalar_lea.vmem %s1735_s2, %s1194_s13  ;;  %v398_v18 = vld [vmem:[%s1738_s5] sm:$0xff]  ;;  %v391_v20 = vld [vmem:[%s1737_s4 + $0x8] sm:$0xff]  ;;  %v392_v23 = vld [vmem:[%s1737_s4 + $0x10] sm:$0xff] }
   0xf   : > { %1223 = vset.pattern.permute.xlu2 %v1270_v2  ;;  %v396_v4 = vld [vmem:[%s368_s12 + $0x10] sm:$0xff]  ;;  %v397_v5 = vld [vmem:[%s368_s12 + $0x18] sm:$0xff]  ;;  %v394_v6 = vld [vmem:[%s368_s12] sm:$0xff]  ;;  %s1192_s8 = sshll.u32 %s1752_s24, 2  ;;  %s1627_s15 = scalar_lea.vmem %s1740_s7, %s1194_s13 }
  0x10   : > { %601 = vperm.xlu2 %1223, %v553_v3   ;;  %508 = vmatpush.msra.mxu2 %v396_v4  ;;  %v395_v7 = vld [vmem:[%s368_s12 + $0x8] sm:$0xff]  ;;  %v408_v8 = vld [vmem:[%s378_s16 + $0x30] sm:$0xff]  ;;  %v409_v9 = vld [vmem:[%s378_s16 + $0x38] sm:$0xff]  ;;  %s358_s11 = scalar_lea.vmem %s1733_s0, %s1192_s8 }
  0x11   : > { %537 = vmatpush.msra.mxu3 %v397_v5  ;;  %435 = vmatpush.msra.mxu0 %v408_v8  ;;  %v406_v11 = vld [vmem:[%s378_s16 + $0x20] sm:$0xff]  ;;  %v407_v12 = vld [vmem:[%s378_s16 + $0x28] sm:$0xff]  ;;  %v404_v14 = vld [vmem:[%s378_s16 + $0x10] sm:$0xff] }
  0x12   : > { %464 = vmatpush.msra.mxu1 %v409_v9  ;;  %509 = vmatpush.msra.mxu2 %v394_v6  ;;  %v405_v15 = vld [vmem:[%s378_s16 + $0x18] sm:$0xff]  ;;  %v402_v16 = vld [vmem:[%s378_s16] sm:$0xff]  ;;  %v403_v17 = vld [vmem:[%s378_s16 + $0x8] sm:$0xff] }
  0x13   : > { %538 = vmatpush.msra.mxu3 %v395_v7  ;;  %1174 = vmatmul.msk.f32.vlgmr.msra.gmra.mxu2 %vm481_vm0, %v390_v10  ;;  %v638_v21 = vld [vmem:[%s1739_s6] sm:$0xff]  ;;  %v399_v22 = vld [vmem:[%s1738_s5 + $0x8] sm:$0xff]  ;;  %v641_v25 = vld [vmem:[%s1739_s6 + $0x18] sm:$0xff] }
  0x14   : > { %1178 = vmatmul.msk.f32.vlgmr.msra.gmra.mxu3 %vm481_vm0, %v390_v10  ;;  %436 = vmatpush.msra.mxu0 %v406_v11  ;;  %v639_v24 = vld [vmem:[%s1739_s6 + $0x8] sm:$0xff]  ;;  %v640_v26 = vld [vmem:[%s1739_s6 + $0x10] sm:$0xff]  ;;  %v393_v28 = vld [vmem:[%s1737_s4 + $0x18] sm:$0xff] }
  0x15   : > { %465 = vmatpush.msra.mxu1 %v407_v12  ;;  %v400_v27 = vld [vmem:[%s1738_s5 + $0x10] sm:$0xff]  ;;  %v401_v29 = vld [vmem:[%s1738_s5 + $0x18] sm:$0xff]  ;;  %v552_v31 = vld [vmem:[%s358_s11] sm:$0xf] }
  0x16   : > { %574 = vperm.xlu1 %1222, %v556_v13   ;;  %1225 = vset.pattern.permute.xlu0 %v1269_v1  ;;  %v579_v32 = vperm.slane %v552_v31, 2  ;;  %v578_v38 = vperm.slane %v552_v31, 0  ;;  %v616_v39 = vperm.slane %v552_v31, 1  ;;  %v617_v40 = vperm.slane %v552_v31, 3 }
  0x17   : > { %437 = vmatpush.msra.mxu0 %v404_v14  ;;  %466 = vmatpush.msra.mxu1 %v405_v15 }
  0x18   : > { %559 = vperm.xlu0 %1225, %v553_v3   ;;  %605 = vperm.xlu2 %1223, %v554_v19   ;;  %v1415_v33 = vperm.slane %v579_v32, 0  ;;  %v1425_v42 = vperm.slane %v578_v38, 0  ;;  %v1427_v44 = vperm.slane %v616_v39, 1  ;;  %v1429_v45 = vperm.slane %v617_v40, 1 }
  0x19   : > { %438 = vmatpush.msra.mxu0 %v402_v16  ;;  %467 = vmatpush.msra.mxu1 %v403_v17 }
  0x1a   : > { %1166 = vmatmul.msk.f32.vlgmr.msra.gmra.mxu0 %vm410_vm1, %v398_v18  ;;  %1170 = vmatmul.msk.f32.vlgmr.msra.gmra.mxu1 %vm410_vm1, %v398_v18 }
  0x1b   : > { %1175 = vmatmul.msk.f32.gmra.mxu2 %vm481_vm0, %v391_v20 }
  0x1c   : > { %1179 = vmatmul.msk.f32.gmra.mxu3 %vm481_vm0, %v391_v20 }
  0x1e   : > { %1226 = vset.pattern.permute.xlu1 %v1270_v2 }
  0x1f   : > { %613 = vperm.xlu1 %1226, %v556_v13  }
  0x20   : > { %564 = vperm.xlu0 %1225, %v554_v19   ;;  %1227 = vset.pattern.permute.xlu2 %v1269_v1 }
  0x21   : > { %644 = vperm.xlu2 %1227, %v638_v21  }
  0x22   : > { %1167 = vmatmul.msk.f32.gmra.mxu0 %vm410_vm1, %v399_v22  ;;  %1171 = vmatmul.msk.f32.gmra.mxu1 %vm410_vm1, %v399_v22 }
  0x23   : > { %1176 = vmatmul.msk.f32.gmra.mxu2 %vm481_vm0, %v392_v23 }
  0x24   : > { %1180 = vmatmul.msk.f32.gmra.mxu3 %vm481_vm0, %v392_v23 }
  0x27   : > { %1228 = vset.pattern.permute.xlu1 %v1269_v1 }
  0x28   : > { %649 = vperm.xlu1 %1228, %v639_v24   ;;  %659 = vperm.xlu0 %1225, %v641_v25  }
  0x29   : > { %654 = vperm.xlu2 %1227, %v640_v26  }
  0x2a   : > { %1168 = vmatmul.msk.f32.gmra.mxu0 %vm410_vm1, %v400_v27  ;;  %1172 = vmatmul.msk.f32.gmra.mxu1 %vm410_vm1, %v400_v27 }
  0x2b   : > { %1177 = vmatmul.msk.f32.gmra.mxu2 %vm481_vm0, %v393_v28 }
  0x2c   : > { %1181 = vmatmul.msk.f32.gmra.mxu3 %vm481_vm0, %v393_v28 }
  0x32   : > { %1169 = vmatmul.msk.f32.gmra.mxu0 %vm410_vm1, %v401_v29  ;;  %1173 = vmatmul.msk.f32.gmra.mxu1 %vm410_vm1, %v401_v29 }
  0x6a   : > { %v602_v34 = vpop.permute.xlu2 %601 }
  0x6b   : > { %v622_v52 = vmul.f32 %v1427_v44, %v602_v34  ;;  %v623_v53 = vmul.f32 %v1429_v45, %v602_v34 }
  0x72   : > { %v606_v41 = vpop.permute.xlu2 %605 }
  0x73   : > { %v624_v13 = vmul.f32 %v1427_v44, %v606_v41  ;;  %v625_v14 = vmul.f32 %v1429_v45, %v606_v41 }
  0x7b   : > { %v645_v59 = vpop.permute.xlu2 %644 }
  0x80   : > { %v1413_v30 = vpop.permute.xlu1 %569  ;;  %v1423_v37 = vpop.permute.xlu0 %609 }
  0x88   : > { %v1417_v35 = vpop.permute.xlu1 %574 }
  0x89   : > { %v1421_v36 = vmul.f32 %v1415_v33, %v1417_v35 }
  0x8a   : > { %v560_v43 = vpop.permute.xlu0 %559 }
  0x8b   : > { %v584_v46 = vmul.f32 %v1425_v42, %v560_v43  ;;  %v585_v47 = vmul.f32 %v1415_v33, %v560_v43 }
  0x91   : > { %v1435_v58 = vpop.permute.xlu1 %613 }
  0x92   : > { %v565_v62 = vpop.permute.xlu0 %564 }
  0x93   : > { %v586_v3 = vmul.f32 %v1425_v42, %v565_v62  ;;  %v587_v4 = vmul.f32 %v1415_v33, %v565_v62 }
  0x96   : > { %v511_v50 = vpop.f32.mrf.mxu2 }
  0x97   : > { %v440_v48 = vpop.f32.mrf.mxu0  ;;  %v469_v49 = vpop.f32.mrf.mxu1 }
  0x98   : > { %v540_v51 = vpop.f32.mrf.mxu3  ;;  %v512_v54 = vadd.f32 %v511_v50, %v440_v48  ;;  %v627_v48 = vmul.f32 %v1429_v45, %v1423_v37 }
  0x99   : > { %v541_v55 = vadd.f32 %v540_v51, %v469_v49 }
  0x9a   : > { %v592_v56 = vadd.f32 %v584_v46, %v512_v54  ;;  %v650_v19 = vpop.permute.xlu1 %649 }
  0x9b   : > { %v593_v57 = vadd.f32 %v585_v47, %v541_v55  ;;  %v626_v47 = vmul.f32 %v1427_v44, %v1423_v37  ;;  %v588_v55 = vmul.f32 %v1425_v42, %v1413_v30 }
  0x9c   : > { %v630_v60 = vadd.f32 %v622_v52, %v592_v56 }
  0x9d   : > { %v631_v61 = vadd.f32 %v623_v53, %v593_v57 }
  0x9e   : > { %v1437_v63 = vadd.f32 %v645_v59, %v630_v60  ;;  %v514_v5 = vpop.f32.mrf.mxu2 }
  0x9f   : > { %v1439_v0 = vadd.f32 %v645_v59, %v631_v61  ;;  %v443_v1 = vpop.f32.mrf.mxu0  ;;  %v472_v2 = vpop.f32.mrf.mxu1 }
  0xa0   : > { %v543_v6 = vpop.f32.mrf.mxu3  ;;  %v1444_v7 = vmul.f32 0.70710677, %v1437_v63  ;;  %v515_v9 = vadd.f32 %v514_v5, %v443_v1 }
  0xa1   : > { %v1447_v8 = vmul.f32 0.70710677, %v1439_v0  ;;  %v544_v10 = vadd.f32 %v543_v6, %v472_v2 }
  0xa2   : > { %v686_v11 = vmul.f32 %v1444_v7, %v1444_v7  ;;  %v594_v15 = vadd.f32 %v586_v3, %v515_v9  ;;  %v589_v3 = vmul.f32 %v1415_v33, %v1413_v30 }
  0xa3   : > { %v726_v12 = vmul.f32 %v1447_v8, %v1447_v8  ;;  %v595_v16 = vadd.f32 %v587_v4, %v544_v10 }
  0xa4   : > { %v1455_v17 = vmin.f32 %v686_v11, 16.0  ;;  %v632_v20 = vadd.f32 %v624_v13, %v594_v15 }
  0xa5   : > { %v1457_v18 = vmin.f32 %v726_v12, 16.0  ;;  %v633_v21 = vadd.f32 %v625_v14, %v595_v16 }
  0xa6   : > { %v688_v22 = vmul.f32 2.1237322e-06, %v1455_v17  ;;  %v699_v23 = vmul.f32 3.8918573e-05, %v1455_v17  ;;  %v1463_v26 = vadd.f32 %v650_v19, %v632_v20  ;;  %v517_v46 = vpop.f32.mrf.mxu2 }
  0xa7   : > { %v728_v24 = vmul.f32 2.1237322e-06, %v1457_v18  ;;  %v739_v25 = vmul.f32 3.8918573e-05, %v1457_v18  ;;  %v1465_v27 = vadd.f32 %v650_v19, %v633_v21  ;;  %v446_v43 = vpop.f32.mrf.mxu0  ;;  %v475_v59 = vpop.f32.mrf.mxu1 }
  0xa8   : > { %v689_v28 = vadd.f32 0.00028619796, %v688_v22  ;;  %v700_v29 = vadd.f32 0.001143296, %v699_v23  ;;  %v1468_v34 = vmul.f32 0.70710677, %v1463_v26  ;;  %v518_v60 = vadd.f32 %v517_v46, %v446_v43  ;;  %v546_v37 = vpop.f32.mrf.mxu3 }
  0xa9   : > { %v729_v31 = vadd.f32 0.00028619796, %v728_v24  ;;  %v740_v32 = vadd.f32 0.001143296, %v739_v25  ;;  %v1474_v41 = vmul.f32 0.70710677, %v1465_v27  ;;  %v547_v12 = vadd.f32 %v546_v37, %v475_v59 }
  0xaa   : > { %v690_v38 = vmul.f32 %v689_v28, %v1455_v17  ;;  %v701_v39 = vmul.f32 %v700_v29, %v1455_v17  ;;  %v766_v50 = vmul.f32 %v1468_v34, %v1468_v34  ;;  %v596_v16 = vadd.f32 %v588_v55, %v518_v60 }
  0xab   : > { %v730_v40 = vmul.f32 %v729_v31, %v1457_v18  ;;  %v741_v49 = vmul.f32 %v740_v32, %v1457_v18  ;;  %v806_v54 = vmul.f32 %v1474_v41, %v1474_v41  ;;  %v597_v31 = vadd.f32 %v589_v3, %v547_v12 }
  0xac   : > { %v691_v51 = vadd.f32 0.0036580483, %v690_v38  ;;  %v702_v52 = vadd.f32 0.014752088, %v701_v39  ;;  %v1487_v57 = vmin.f32 %v766_v50, 16.0  ;;  %v1509_v32 = vmul.f32 %v1425_v42, %v1417_v35 }
  0xad   : > { %v731_v53 = vadd.f32 0.0036580483, %v730_v40  ;;  %v742_v56 = vadd.f32 0.014752088, %v741_v49  ;;  %v1492_v2 = vmin.f32 %v806_v54, 16.0  ;;  %v634_v42 = vadd.f32 %v626_v47, %v596_v16 }
  0xae   : > { %v692_v61 = vmul.f32 %v691_v51, %v1455_v17  ;;  %v703_v62 = vmul.f32 %v702_v52, %v1455_v17  ;;  %v768_v5 = vmul.f32 2.1237322e-06, %v1487_v57  ;;  %v779_v6 = vmul.f32 3.8918573e-05, %v1487_v57 }
  0xaf   : > { %v732_v1 = vmul.f32 %v731_v53, %v1457_v18  ;;  %v743_v4 = vmul.f32 %v742_v56, %v1457_v18  ;;  %v808_v33 = vmul.f32 2.1237322e-06, %v1492_v2  ;;  %v819_v24 = vmul.f32 3.8918573e-05, %v1492_v2  ;;  %v449_v47 = vpop.f32.mrf.mxu0 }
  0xb0   : > { %v693_v9 = vadd.f32 0.05243302, %v692_v61  ;;  %v704_v10 = vadd.f32 0.112945676, %v703_v62  ;;  %v769_v14 = vadd.f32 0.00028619796, %v768_v5  ;;  %v635_v56 = vadd.f32 %v627_v48, %v597_v31  ;;  %v655_v61 = vpop.permute.xlu2 %654  ;;  %v478_v48 = vpop.f32.mrf.mxu1 }
  0xb1   : > { %v733_v11 = vadd.f32 0.05243302, %v732_v1  ;;  %v744_v13 = vadd.f32 0.112945676, %v743_v4  ;;  %v780_v15 = vadd.f32 0.001143296, %v779_v6  ;;  %v1529_v62 = vmul.f32 %v1429_v45, %v1435_v58  ;;  %v549_v6 = vpop.f32.mrf.mxu3 }
  0xb2   : > { %v694_v19 = vmul.f32 %v693_v9, %v1455_v17  ;;  %v705_v20 = vmul.f32 %v704_v10, %v1455_v17  ;;  %v770_v22 = vmul.f32 %v769_v14, %v1487_v57  ;;  %v809_v50 = vadd.f32 0.00028619796, %v808_v33 }
  0xb3   : > { %v734_v30 = vmul.f32 %v733_v11, %v1457_v18  ;;  %v745_v21 = vmul.f32 %v744_v13, %v1457_v18  ;;  %v781_v23 = vmul.f32 %v780_v15, %v1487_v57  ;;  %v820_v54 = vadd.f32 0.001143296, %v819_v24 }
  0xb4   : > { %v695_v25 = vadd.f32 0.18741608, %v694_v19  ;;  %v706_v28 = vadd.f32 0.4994258, %v705_v20  ;;  %v771_v39 = vadd.f32 0.0036580483, %v770_v22  ;;  %v810_v35 = vmul.f32 %v809_v50, %v1492_v2 }
  0xb5   : > { %v735_v29 = vadd.f32 0.18741608, %v734_v30  ;;  %v746_v38 = vadd.f32 0.4994258, %v745_v21  ;;  %v782_v40 = vadd.f32 0.014752088, %v781_v23  ;;  %v821_v37 = vmul.f32 %v820_v54, %v1492_v2 }
  0xb6   : > { %v696_v43 = vmul.f32 %v695_v25, %v1455_v17  ;;  %v707_v46 = vmul.f32 %v706_v28, %v1455_v17  ;;  %v772_v52 = vmul.f32 %v771_v39, %v1487_v57  ;;  %v1533_v3 = vmul.f32 0.5, %v1437_v63 }
  0xb7   : > { %v736_v49 = vmul.f32 %v735_v29, %v1457_v18  ;;  %v747_v51 = vmul.f32 %v746_v38, %v1457_v18  ;;  %v783_v53 = vmul.f32 %v782_v40, %v1487_v57  ;;  %v1525_v18 = vmul.f32 %v1427_v44, %v1435_v58  ;;  %v520_v44 = vpop.f32.mrf.mxu2 }
  0xb8   : > { %v1517_v55 = vadd.f32 1.0, %v707_v46  ;;  %v773_v60 = vadd.f32 0.05243302, %v772_v52  ;;  %v697_v1 = vadd.f32 1.1283791, %v696_v43  ;;  %v1536_v4 = vmul.f32 0.5, %v1439_v0 }
  0xb9   : > { %v1520_v59 = vadd.f32 1.0, %v747_v51  ;;  %v784_v17 = vadd.f32 0.112945676, %v783_v53  ;;  %v737_v5 = vadd.f32 1.1283791, %v736_v49  ;;  %v1540_v9 = vmul.f32 0.5, %v1463_v26 }
  0xba   : > { %1229 = vrcp.f32 %v1517_v55  ;;  %v774_v45 = vmul.f32 %v773_v60, %v1487_v57  ;;  %v1543_v58 = vadd.f32 %v655_v61, %v634_v42  ;;  %v1545_v10 = vadd.f32 %v655_v61, %v635_v56 }
  0xbb   : > { %1231 = vrcp.f32 %v1520_v59  ;;  %v718_v63 = vand.u32 2147483647, %v1517_v55  ;;  %v785_v11 = vmul.f32 %v784_v17, %v1487_v57  ;;  %v811_v0 = vadd.f32 0.0036580483, %v810_v35 }
  0xbc   : > { %v822_v12 = vadd.f32 0.014752088, %v821_v37  ;;  %v698_v13 = vmul.f32 %v697_v1, %v1444_v7  ;;  %v720_v14 = vand.u32 2147483648, %v1517_v55  ;;  %v1551_v15 = vadd.f32 %v520_v44, %v449_v47 }
  0xbd   : > { %v1553_v26 = vadd.f32 %v549_v6, %v478_v48  ;;  %vm714_vm2 = vweird.f32 %v1517_v55  ;;  %v738_v16 = vmul.f32 %v737_v5, %v1447_v8  ;;  %v786_v19 = vadd.f32 0.4994258, %v785_v11 }
  0xbe   : > { %v812_v20 = vmul.f32 %v811_v0, %v1492_v2  ;;  %v823_v30 = vmul.f32 %v822_v12, %v1492_v2  ;;  %vm754_vm3 = vweird.f32 %v1520_v59  ;;  %v775_v21 = vadd.f32 0.18741608, %v774_v45 }
  0xbf   : > { %v1561_v7 = vmul.f32 0.70710677, %v1543_v58  ;;  %v1564_v22 = vmul.f32 0.70710677, %v1545_v10  ;;  %vm1567_vm4 = vcmp.eq.f32.partialorder %v718_v63, 8.507059e+37  ;;  %v787_v25 = vmul.f32 %v786_v19, %v1487_v57 }
  0xc0   : > { %v1230_v33 = vpop.eup %1229  ;;  %v813_v28 = vadd.f32 0.05243302, %v812_v20  ;;  %v758_v31 = vand.u32 2147483647, %v1520_v59  ;;  %v760_v38 = vand.u32 2147483648, %v1520_v59  ;;  %v721_v43 = vor.u32 1.1754944e-38, %v720_v14 }
  0xc1   : > { %v1232_v23 = vpop.eup %1231  ;;  %v710_v24 = vmul.f32 %v1230_v33, %v1517_v55  ;;  %v824_v39 = vadd.f32 0.112945676, %v823_v30  ;;  %v1575_v46 = vadd.f32 1.0, %v787_v25  ;;  %v846_v49 = vmul.f32 %v1561_v7, %v1561_v7 }
  0xc2   : > { %v750_v29 = vmul.f32 %v1232_v23, %v1520_v59  ;;  %v776_v51 = vmul.f32 %v775_v21, %v1487_v57  ;;  %v886_v53 = vmul.f32 %v1564_v22, %v1564_v22  ;;  %vm715_vm5 = vweird.f32 %v1230_v33 }
  0xc3   : > { %v711_v40 = vsub.f32 1.0, %v710_v24  ;;  %v825_v52 = vmul.f32 %v824_v39, %v1492_v2  ;;  %1233 = vrcp.f32 %v1575_v46  ;;  %v814_v35 = vmul.f32 %v813_v28, %v1492_v2  ;;  %vm716_vm8 = vmor %vm714_vm2, %vm715_vm5 }
  0xc4   : > { %v751_v50 = vsub.f32 1.0, %v750_v29  ;;  %vm755_vm6 = vweird.f32 %v1232_v23  ;;  %vm1585_vm7 = vcmp.eq.f32.partialorder %v758_v31, 8.507059e+37  ;;  %v761_v57 = vor.u32 1.1754944e-38, %v760_v38 }
  0xc5   : > { %v712_v54 = vmul.f32 %v1230_v33, %v711_v40  ;;  %v826_v60 = vadd.f32 0.4994258, %v825_v52  ;;  %v1589_v37 = vmin.f32 %v846_v49, 16.0  ;;  %v1591_v61 = vmin.f32 %v886_v53, 16.0  ;;  %vm756_vm9 = vmor %vm754_vm3, %vm755_vm6 }
  0xc6   : > { %v752_v42 = vmul.f32 %v1232_v23, %v751_v50  ;;  %v777_v47 = vadd.f32 1.1283791, %v776_v51  ;;  %v798_v48 = vand.u32 2147483647, %v1575_v46  ;;  %v815_v6 = vadd.f32 0.18741608, %v814_v35 }
  0xc7   : > { %v713_v17 = vadd.f32 %v1230_v33, %v712_v54  ;;  %v827_v5 = vmul.f32 %v826_v60, %v1492_v2  ;;  %v848_v45 = vmul.f32 2.1237322e-06, %v1589_v37  ;;  %v859_v63 = vmul.f32 3.8918573e-05, %v1589_v37 }
  0xc8   : > { %v753_v1 = vadd.f32 %v1232_v23, %v752_v42  ;;  %v888_v12 = vmul.f32 2.1237322e-06, %v1591_v61  ;;  %v778_v21 = vmul.f32 %v777_v47, %v1468_v34  ;;  %vm794_vm10 = vweird.f32 %v1575_v46 }
  0xc9   : > { %v717_v44 = vsel %vm716_vm8, %v1230_v33, %v713_v17  ;;  %v1603_v0 = vadd.f32 1.0, %v827_v5  ;;  %v1234_v14 = vpop.eup %1233  ;;  %v849_v59 = vadd.f32 0.00028619796, %v848_v45  ;;  %v860_v30 = vadd.f32 0.001143296, %v859_v63 }
  0xca   : > { %v722_v11 = vsel %vm1567_vm4, %v721_v43, %v717_v44  ;;  %v757_v55 = vsel %vm756_vm9, %v1232_v23, %v753_v1  ;;  %v790_v24 = vmul.f32 %v1234_v14, %v1575_v46  ;;  %v598_v23 = vadd.f32 %v1509_v32, %v1551_v15  ;;  %v660_v1 = vpop.permute.xlu0 %659 }
  0xcb   : > { %v723_v19 = vmul.f32 %v722_v11, %v698_v13  ;;  %v762_v20 = vsel %vm1585_vm7, %v761_v57, %v757_v55  ;;  %v800_v25 = vand.u32 2147483648, %v1575_v46  ;;  %1235 = vrcp.f32 %v1603_v0 }
  0xcc   : > { %v763_v33 = vmul.f32 %v762_v20, %v738_v16  ;;  %v791_v28 = vsub.f32 1.0, %v790_v24  ;;  %vm1615_vm11 = vcmp.eq.f32.partialorder %v798_v48, 8.507059e+37  ;;  %v850_v34 = vmul.f32 %v849_v59, %v1589_v37 }
  0xcd   : > { %v1182_v8 = vclamps-f32 %v723_v19, 1.0  ;;  %v816_v31 = vmul.f32 %v815_v6, %v1492_v2  ;;  %v861_v32 = vmul.f32 %v860_v30, %v1589_v37  ;;  %v889_v15 = vadd.f32 0.00028619796, %v888_v12 }
  0xce   : > { %v1183_v13 = vclamps-f32 %v763_v33, 1.0  ;;  %v792_v39 = vmul.f32 %v1234_v14, %v791_v28  ;;  %vm795_vm12 = vweird.f32 %v1234_v14  ;;  %v851_v40 = vadd.f32 0.0036580483, %v850_v34 }
  0xcf   : > { %v1006_v16 = vadd.f32 1.0, %v1182_v8  ;;  %v801_v49 = vor.u32 1.1754944e-38, %v800_v25  ;;  %v862_v50 = vadd.f32 0.014752088, %v861_v32  ;;  %v899_v2 = vmul.f32 3.8918573e-05, %v1591_v61  ;;  %vm796_vm13 = vmor %vm794_vm10, %vm795_vm12 }
  0xd0   : > { %v1007_v38 = vadd.f32 1.0, %v1183_v13  ;;  %v793_v52 = vadd.f32 %v1234_v14, %v792_v39  ;;  %v890_v53 = vmul.f32 %v889_v15, %v1591_v61  ;;  %v636_v54 = vadd.f32 %v1525_v18, %v598_v23 }
  0xd1   : > { %v1014_v43 = vmul.f32 %v1006_v16, %v1533_v3  ;;  %v1236_v35 = vpop.eup %1235  ;;  %v852_v42 = vmul.f32 %v851_v40, %v1589_v37  ;;  %v863_v3 = vmul.f32 %v862_v50, %v1589_v37  ;;  %v900_v56 = vadd.f32 0.001143296, %v899_v2 }
  0xd2   : > { %v1015_v51 = vmul.f32 %v1007_v38, %v1536_v4  ;;  %v599_v60 = vadd.f32 %v1421_v36, %v1553_v26  ;;  %v797_v4 = vsel %vm796_vm13, %v1234_v14, %v793_v52  ;;  %v817_v17 = vadd.f32 1.1283791, %v816_v31 }
  0xd3   : > { %1022 = vst [vmem:[%s1627_s15] sm:$0xff] %v1014_v43  ;;  %v830_v57 = vmul.f32 %v1236_v35, %v1603_v0  ;;  %vm834_vm14 = vweird.f32 %v1603_v0  ;;  %v802_v18 = vsel %vm1615_vm11, %v801_v49, %v797_v4  ;;  %v840_v46 = vand.u32 2147483648, %v1603_v0 }
  0xd4   : > { %1023 = vst [vmem:[%s1627_s15 + $0x8] sm:$0xff] %v1015_v51  ;;  %v864_v47 = vadd.f32 0.112945676, %v863_v3  ;;  %v901_v48 = vmul.f32 %v900_v56, %v1591_v61  ;;  %v803_v5 = vmul.f32 %v802_v18, %v778_v21  ;;  %v891_v6 = vadd.f32 0.0036580483, %v890_v53 }
  0xd5   : > { %v831_v44 = vsub.f32 1.0, %v830_v57  ;;  %v1648_v36 = vadd.f32 %v660_v1, %v636_v54  ;;  %v853_v26 = vadd.f32 0.05243302, %v852_v42  ;;  %v637_v11 = vadd.f32 %v1529_v62, %v599_v60 }
  0xd6   : > { %v865_v45 = vmul.f32 %v864_v47, %v1589_v37  ;;  %v902_v63 = vadd.f32 0.014752088, %v901_v48  ;;  %v1184_v55 = vclamps-f32 %v803_v5, 1.0  ;;  %vm835_vm15 = vweird.f32 %v1236_v35 }
  0xd7   : > { %v832_v12 = vmul.f32 %v1236_v35, %v831_v44  ;;  %v838_v14 = vand.u32 2147483647, %v1603_v0  ;;  %v841_v19 = vor.u32 1.1754944e-38, %v840_v46  ;;  %v1655_v30 = vmul.f32 0.70710677, %v1648_v36  ;;  %vm836_vm0 = vmor %vm834_vm14, %vm835_vm15 }
  0xd8   : > { %v866_v20 = vadd.f32 0.4994258, %v865_v45  ;;  %v903_v59 = vmul.f32 %v902_v63, %v1591_v61  ;;  %v1008_v21 = vadd.f32 1.0, %v1184_v55  ;;  %v892_v24 = vmul.f32 %v891_v6, %v1591_v61 }
  0xd9   : > { %v833_v33 = vadd.f32 %v1236_v35, %v832_v12  ;;  %v1658_v23 = vadd.f32 %v660_v1, %v637_v11  ;;  %v854_v62 = vmul.f32 %v853_v26, %v1589_v37  ;;  %v926_v13 = vmul.f32 %v1655_v30, %v1655_v30 }
  0xda   : > { %v867_v8 = vmul.f32 %v866_v20, %v1589_v37  ;;  %v904_v25 = vadd.f32 0.112945676, %v903_v59  ;;  %v818_v28 = vmul.f32 %v817_v17, %v1474_v41  ;;  %vm839_vm1 = vcmp.eq.f32.partialorder %v838_v14, 8.507059e+37 }
  0xdb   : > { %v837_v29 = vsel %vm836_vm0, %v1236_v35, %v833_v33  ;;  %v1016_v34 = vmul.f32 %v1008_v21, %v1540_v9  ;;  %v1670_v15 = vmin.f32 %v926_v13, 16.0  ;;  %v1673_v38 = vmul.f32 0.70710677, %v1658_v23 }
  0xdc   : > { %v842_v16 = vsel %vm839_vm1, %v841_v19, %v837_v29  ;;  %v868_v31 = vadd.f32 1.0, %v867_v8  ;;  %v905_v32 = vmul.f32 %v904_v25, %v1591_v61  ;;  %v855_v39 = vadd.f32 0.18741608, %v854_v62 }
  0xdd   : > { %v843_v0 = vmul.f32 %v842_v16, %v818_v28  ;;  %1024 = vst [vmem:[%s1627_s15 + $0x10] sm:$0xff] %v1016_v34  ;;  %v893_v40 = vadd.f32 0.05243302, %v892_v24  ;;  %v966_v49 = vmul.f32 %v1673_v38, %v1673_v38  ;;  %v928_v9 = vmul.f32 2.1237322e-06, %v1670_v15 }
  0xde   : > { %1237 = vrcp.f32 %v868_v31  ;;  %v906_v41 = vadd.f32 0.4994258, %v905_v32  ;;  %v939_v50 = vmul.f32 3.8918573e-05, %v1670_v15  ;;  %v673_v2 = vmul.f32 0.5, %v1465_v27 }
  0xdf   : > { %v1185_v43 = vclamps-f32 %v843_v0, 1.0  ;;  %v1681_v53 = vmin.f32 %v966_v49, 16.0  ;;  %v856_v54 = vmul.f32 %v855_v39, %v1589_v37  ;;  %v894_v35 = vmul.f32 %v893_v40, %v1591_v61 }
  0xe0   : > { %v907_v52 = vmul.f32 %v906_v41, %v1591_v61  ;;  %v929_v42 = vadd.f32 0.00028619796, %v928_v9  ;;  %v940_v3 = vadd.f32 0.001143296, %v939_v50  ;;  %v878_v1 = vand.u32 2147483647, %v868_v31 }
  0xe1   : > { %v1009_v51 = vadd.f32 1.0, %v1185_v43  ;;  %v968_v4 = vmul.f32 2.1237322e-06, %v1681_v53  ;;  %v979_v18 = vmul.f32 3.8918573e-05, %v1681_v53  ;;  %v880_v6 = vand.u32 2147483648, %v868_v31 }
  0xe2   : > { %v1685_v60 = vadd.f32 1.0, %v907_v52  ;;  %v930_v57 = vmul.f32 %v929_v42, %v1670_v15  ;;  %v941_v27 = vmul.f32 %v940_v3, %v1670_v15  ;;  %v857_v37 = vadd.f32 1.1283791, %v856_v54 }
  0xe3   : > { %v1017_v56 = vmul.f32 %v1009_v51, %v673_v2  ;;  %v895_v47 = vadd.f32 0.18741608, %v894_v35  ;;  %v969_v44 = vadd.f32 0.00028619796, %v968_v4  ;;  %v980_v45 = vadd.f32 0.001143296, %v979_v18 }
  0xe4   : > { %v1238_v17 = vpop.eup %1237  ;;  %1239 = vrcp.f32 %v1685_v60  ;;  %v942_v5 = vadd.f32 0.014752088, %v941_v27  ;;  %v931_v26 = vadd.f32 0.0036580483, %v930_v57  ;;  %v858_v20 = vmul.f32 %v857_v37, %v1561_v7 }
  0xe5   : > { %1025 = vst [vmem:[%s1627_s15 + $0x18] sm:$0xff] %v1017_v56  ;;  %v870_v46 = vmul.f32 %v1238_v17, %v868_v31  ;;  %vm875_vm2 = vweird.f32 %v1238_v17  ;;  %v970_v55 = vmul.f32 %v969_v44, %v1681_v53  ;;  %v896_v12 = vmul.f32 %v895_v47, %v1591_v61 }
  0xe6   : > { %v943_v11 = vmul.f32 %v942_v5, %v1670_v15  ;;  %v981_v14 = vmul.f32 %v980_v45, %v1681_v53  ;;  %vm874_vm3 = vweird.f32 %v868_v31  ;;  %v881_v21 = vor.u32 1.1754944e-38, %v880_v6 }
  0xe7   : > { %v871_v48 = vsub.f32 1.0, %v870_v46  ;;  %vm876_vm4 = vmor %vm874_vm3, %vm875_vm2  ;;  %v932_v62 = vmul.f32 %v931_v26, %v1670_v15  ;;  %vm879_vm5 = vcmp.eq.f32.partialorder %v878_v1, 8.507059e+37  ;;  %v971_v61 = vadd.f32 0.0036580483, %v970_v55 }
  0xe8   : > { %v944_v33 = vadd.f32 0.112945676, %v943_v11  ;;  %v982_v8 = vadd.f32 0.014752088, %v981_v14  ;;  %v897_v29 = vadd.f32 1.1283791, %v896_v12  ;;  %vm914_vm7 = vweird.f32 %v1685_v60 }
  0xe9   : > { %v872_v63 = vmul.f32 %v1238_v17, %v871_v48  ;;  %v918_v31 = vand.u32 2147483647, %v1685_v60  ;;  %v920_v32 = vand.u32 2147483648, %v1685_v60  ;;  %v933_v40 = vadd.f32 0.05243302, %v932_v62 }
  0xea   : > { %v1240_v19 = vpop.eup %1239  ;;  %v945_v13 = vmul.f32 %v944_v33, %v1670_v15  ;;  %v983_v7 = vmul.f32 %v982_v8, %v1681_v53  ;;  %v972_v9 = vmul.f32 %v971_v61, %v1681_v53  ;;  %v674_v50 = vmul.f32 0.5, %v1543_v58 }
  0xeb   : > { %v873_v59 = vadd.f32 %v1238_v17, %v872_v63  ;;  %v910_v24 = vmul.f32 %v1240_v19, %v1685_v60  ;;  %vm915_vm6 = vweird.f32 %v1240_v19  ;;  %v898_v52 = vmul.f32 %v897_v29, %v1564_v22 }
  0xec   : > { %v946_v0 = vadd.f32 0.4994258, %v945_v13  ;;  %v984_v43 = vadd.f32 0.112945676, %v983_v7  ;;  %vm916_vm8 = vmor %vm914_vm7, %vm915_vm6  ;;  %v921_v54 = vor.u32 1.1754944e-38, %v920_v32  ;;  %vm919_vm9 = vcmp.eq.f32.partialorder %v918_v31, 8.507059e+37 }
  0xed   : > { %v877_v25 = vsel %vm876_vm4, %v1238_v17, %v873_v59  ;;  %v911_v34 = vsub.f32 1.0, %v910_v24  ;;  %v934_v56 = vmul.f32 %v933_v40, %v1670_v15  ;;  %v973_v58 = vadd.f32 0.05243302, %v972_v9 }
  0xee   : > { %v882_v28 = vsel %vm879_vm5, %v881_v21, %v877_v25  ;;  %v947_v49 = vmul.f32 %v946_v0, %v1670_v15  ;;  %v985_v51 = vmul.f32 %v984_v43, %v1681_v53  ;;  %v675_v1 = vmul.f32 0.5, %v1545_v10 }
  0xef   : > { %v883_v16 = vmul.f32 %v882_v28, %v858_v20  ;;  %v912_v39 = vmul.f32 %v1240_v19, %v911_v34  ;;  %v935_v22 = vadd.f32 0.18741608, %v934_v56  ;;  %v974_v46 = vmul.f32 %v973_v58, %v1681_v53 }
  0xf0   : > { %v948_v42 = vadd.f32 1.0, %v947_v49  ;;  %v986_v4 = vadd.f32 0.4994258, %v985_v51  ;;  %v676_v29 = vmul.f32 0.5, %v1648_v36  ;;  %v677_v40 = vmul.f32 0.5, %v1658_v23 }
  0xf1   : > { %v1186_v41 = vclamps-f32 %v883_v16, 1.0  ;;  %v913_v2 = vadd.f32 %v1240_v19, %v912_v39  ;;  %v936_v44 = vmul.f32 %v935_v22, %v1670_v15  ;;  %v975_v26 = vadd.f32 0.18741608, %v974_v46 }
  0xf2   : > { %1241 = vrcp.f32 %v948_v42  ;;  %v987_v27 = vmul.f32 %v986_v4, %v1681_v53  ;;  %v960_v63 = vand.u32 2147483648, %v948_v42  ;;  %v958_v12 = vand.u32 2147483647, %v948_v42 }
  0xf3   : > { %v1010_v35 = vadd.f32 1.0, %v1186_v41  ;;  %v917_v3 = vsel %vm916_vm8, %v1240_v19, %v913_v2  ;;  %v937_v11 = vadd.f32 1.1283791, %v936_v44  ;;  %v976_v19 = vmul.f32 %v975_v26, %v1681_v53 }
  0xf4   : > { %v922_v17 = vsel %vm919_vm9, %v921_v54, %v917_v3  ;;  %v988_v37 = vadd.f32 1.0, %v987_v27  ;;  %vm954_vm11 = vweird.f32 %v948_v42  ;;  %v961_v59 = vor.u32 1.1754944e-38, %v960_v63 }
  0xf5   : > { %v1018_v57 = vmul.f32 %v1010_v35, %v674_v50  ;;  %v923_v60 = vmul.f32 %v922_v17, %v898_v52  ;;  %v938_v33 = vmul.f32 %v937_v11, %v1655_v30  ;;  %vm959_vm13 = vcmp.eq.f32.partialorder %v958_v12, 8.507059e+37 }
  0xf6   : > { %1243 = vrcp.f32 %v988_v37  ;;  %v977_v62 = vadd.f32 1.1283791, %v976_v19  ;;  %v1000_v8 = vand.u32 2147483648, %v988_v37  ;;  %v998_v61 = vand.u32 2147483647, %v988_v37 }
  0xf7   : > { %1026 = vst [vmem:[%s1627_s15 + $0x20] sm:$0xff] %v1018_v57  ;;  %v1187_v18 = vclamps-f32 %v923_v60, 1.0  ;;  %vm994_vm15 = vweird.f32 %v988_v37 }
  0xf8   : > { %v1242_v48 = vpop.eup %1241  ;;  %v1001_v34 = vor.u32 1.1754944e-38, %v1000_v8  ;;  %v978_v7 = vmul.f32 %v977_v62, %v1673_v38  ;;  %vm999_vm1 = vcmp.eq.f32.partialorder %v998_v61, 8.507059e+37 }
  0xf9   : > { %v1011_v47 = vadd.f32 1.0, %v1187_v18  ;;  %v950_v6 = vmul.f32 %v1242_v48, %v948_v42  ;;  %vm955_vm10 = vweird.f32 %v1242_v48 }
  0xfa   : > { %vm956_vm12 = vmor %vm954_vm11, %vm955_vm10 }
  0xfb   : > { %v1019_v5 = vmul.f32 %v1011_v47, %v675_v1  ;;  %v951_v45 = vsub.f32 1.0, %v950_v6 }
  0xfc   : > { %v1244_v14 = vpop.eup %1243 }
  0xfd   : > { %1027 = vst [vmem:[%s1627_s15 + $0x28] sm:$0xff] %v1019_v5  ;;  %v952_v55 = vmul.f32 %v1242_v48, %v951_v45  ;;  %v990_v10 = vmul.f32 %v1244_v14, %v988_v37  ;;  %vm995_vm14 = vweird.f32 %v1244_v14 }
  0xfe   : > { %vm996_vm0 = vmor %vm994_vm15, %vm995_vm14 }
  0xff   : > { %v953_v20 = vadd.f32 %v1242_v48, %v952_v55  ;;  %v991_v21 = vsub.f32 1.0, %v990_v10 }
 0x101   : > { %v957_v15 = vsel %vm956_vm12, %v1242_v48, %v953_v20  ;;  %v992_v13 = vmul.f32 %v1244_v14, %v991_v21 }
 0x102   : > { %v962_v24 = vsel %vm959_vm13, %v961_v59, %v957_v15 }
 0x103   : > { %v963_v25 = vmul.f32 %v962_v24, %v938_v33  ;;  %v993_v53 = vadd.f32 %v1244_v14, %v992_v13 }
 0x105   : > { %v1188_v28 = vclamps-f32 %v963_v25, 1.0  ;;  %v997_v16 = vsel %vm996_vm0, %v1244_v14, %v993_v53 }
 0x106   : > { %v1002_v31 = vsel %vm999_vm1, %v1001_v34, %v997_v16 }
 0x107   : > { %v1012_v30 = vadd.f32 1.0, %v1188_v28  ;;  %v1003_v0 = vmul.f32 %v1002_v31, %v978_v7 }
 0x109   : > { %v1020_v32 = vmul.f32 %v1012_v30, %v676_v29  ;;  %v1189_v39 = vclamps-f32 %v1003_v0, 1.0 }
 0x10b   : > { %1028 = vst [vmem:[%s1627_s15 + $0x30] sm:$0xff] %v1020_v32  ;;  %v1013_v43 = vadd.f32 1.0, %v1189_v39 }
 0x10d   : > { %v1021_v41 = vmul.f32 %v1013_v43, %v677_v40 }
 0x10f   : > { %1029 = vst [vmem:[%s1627_s15 + $0x38] sm:$0xff] %v1021_v41 }
 0x110 PF: > { %s17_s26 = sadd.s32 1, %s1267_s26   ;;  %s1747_s24 = smov %s1263_s25 }
 0x111   : > { %p14_p5 = scmp.ge.s32.totalorder %s17_s26, 4   ;;  %s1748_s25 = smov %s1750_s27 }
 0x113   :  { %16 = sbr.rel (!%p14_p5) target bundleno = 2 (0x2), region = 84 }

</bundles_post_ra>
